<compile_context>
chip_gen: v7x
topology: tpu7x:2x2x1
jax: 0.10.0
libtpu: 0.0.40
codegen_flags: <defaults>
</compile_context>

<pallas_src>
import math
import functools

import jax
import jax.numpy as jnp
from jax import lax
from jax.experimental import pallas as pl
from jax.experimental.pallas import tpu as pltpu


# --------------------------------------------------------------------------- #
# helpers
# --------------------------------------------------------------------------- #
def _pick_tile(s, cap):
    """Largest tile <= cap that divides s (prefer multiples of 128, then 16, 8)."""
    if s <= cap:
        return s
    for step in (128, 16, 8):
        start = (cap // step) * step
        for t in range(start, step - 1, -step):
            if s % t == 0:
                return t
    return s  # TODO(synk): pad ragged sequence lengths instead of a full-S tile


def _tpu_defaults():
    """Generation-aware tile caps and scoped-VMEM limit."""
    vmem = None
    try:
        vmem = pltpu.get_tpu_info().vmem_capacity_bytes
    except Exception:
        vmem = None
    if vmem is not None and vmem >= 100 * 1024 * 1024:
        # v5e / v6e: 128 MiB physical VMEM -> larger scoped limit, bigger q tiles.
        return {"vmem_limit": 100 * 1024 * 1024, "q_cap": 512, "kv_cap": 256}
    # v7x (64 MiB) or unknown generation: stay conservative.
    return {"vmem_limit": 56 * 1024 * 1024, "q_cap": 256, "kv_cap": 256}


def _const_spec(shape, single_buffer):
    """BlockSpec for a grid-invariant block (constant index map).

    Single-buffered when requested (double-buffering a constant block is pure
    VMEM waste); falls back to the default if this jax build rejects
    pipeline_mode.
    """
    idx = lambda *_: (0,) * len(shape)
    if single_buffer:
        try:
            return pl.BlockSpec(shape, idx, pipeline_mode=pl.Buffered(1))
        except Exception:
            pass
    return pl.BlockSpec(shape, idx)


# --------------------------------------------------------------------------- #
# stage 1: fused QKV projection kernel
# --------------------------------------------------------------------------- #
def _qkv_proj_kernel(x_ref, w_ref, b_ref, q_ref, k_ref, v_ref, *, hidden, scale):
    cdt = w_ref.dtype                                  # bf16 compute dtype
    x = x_ref[0].astype(cdt)                           # (ts, D_in)
    res = jnp.dot(x, w_ref[...],
                  preferred_element_type=jnp.float32)  # (ts, 3H), f32 acc
    res = res + b_ref[...]                             # f32 bias
    # 1/sqrt(head_dim) folded into Q here (O(S*H) instead of O(S^2*nh)).
    q_ref[0] = (res[:, :hidden] * scale).astype(q_ref.dtype)
    k_ref[0] = res[:, hidden:2 * hidden].astype(k_ref.dtype)
    v_ref[0] = res[:, 2 * hidden:].astype(v_ref.dtype)


def _qkv_projection(x, w_qkv, b_qkv, hidden, scale, ts, compute_dtype,
                    vmem_limit, single_buffer_weights):
    B, S, D_in = x.shape
    H3 = 3 * hidden
    kernel = functools.partial(_qkv_proj_kernel, hidden=hidden, scale=scale)
    out_sds = jax.ShapeDtypeStruct((B, S, hidden), compute_dtype)
    x_spec = pl.BlockSpec((1, ts, D_in), lambda b, si: (b, si, 0))
    o_spec = pl.BlockSpec((1, ts, hidden), lambda b, si: (b, si, 0))
    return pl.pallas_call(
        kernel,
        out_shape=(out_sds, out_sds, out_sds),
        grid_spec=pltpu.PrefetchScalarGridSpec(
            num_scalar_prefetch=0,
            grid=(B, S // ts),
            in_specs=[x_spec,
                      _const_spec((D_in, H3), single_buffer_weights),
                      _const_spec((1, H3), single_buffer_weights)],
            out_specs=[o_spec, o_spec, o_spec]),
        compiler_params=pltpu.CompilerParams(
            dimension_semantics=("parallel", "parallel"),
            vmem_limit_bytes=vmem_limit),
    )(x, w_qkv, b_qkv)


# --------------------------------------------------------------------------- #
# stage 2: flash-style attention kernel
# --------------------------------------------------------------------------- #
def _flash_attn_kernel(q_ref, k_ref, v_ref, o_ref, m_sc, l_sc, acc_sc,
                       *, num_heads, head_dim):
    ki = pl.program_id(2)
    nk = pl.num_programs(2)

    @pl.when(ki == 0)
    def _init():
        m_sc[...] = jnp.full(m_sc.shape, -1e30, m_sc.dtype)
        l_sc[...] = jnp.zeros(l_sc.shape, l_sc.dtype)
        acc_sc[...] = jnp.zeros(acc_sc.shape, acc_sc.dtype)

    q = q_ref[0]        # (tq, H) bf16, already scaled by 1/sqrt(head_dim)
    k = k_ref[0]        # (tk, H) bf16
    v = v_ref[0]        # (tk, H) bf16

    # NOTE: for very large num_heads (>= ~16) slice q/k/v per head from the
    # refs (or use lax.fori_loop) instead of this fully-unrolled loop over
    # live values, to bound vreg pressure.
    for h in range(num_heads):
        lo, hi = h * head_dim, (h + 1) * head_dim
        q_h, k_h, v_h = q[:, lo:hi], k[:, lo:hi], v[:, lo:hi]

        # scores (tq, tk): contract head_dim directly on the MXU, f32 acc.
        # NOTE: head_dim < 128 underfills the 256-wide MXU on v6e/v7x;
        # zero-padding the head slices to 128 lanes would raise utilization.
        s = lax.dot_general(q_h, k_h, (((1,), (1,)), ((), ())),
                            preferred_element_type=jnp.float32)

        m_prev = m_sc[h]                                     # (tq,128) lane-broadcast
        m_new = jnp.maximum(m_prev, jnp.max(s, axis=-1, keepdims=True))
        m_new_c = m_new[:, :1]                               # (tq, 1)
        alpha = jnp.exp(m_prev[:, :1] - m_new_c)             # (tq, 1) -> only tq exps
        # big exp on bf16 inputs (EUP relief on v6e/v7x); stats stay in f32.
        p = jnp.exp((s - m_new_c).astype(jnp.bfloat16))      # (tq, tk) bf16

        l_sc[h] = alpha * l_sc[h] + jnp.sum(p.astype(jnp.float32),
                                            axis=-1, keepdims=True)
        m_sc[h] = m_new

        if p.dtype != v_h.dtype:
            p = p.astype(v_h.dtype)
        pv = lax.dot_general(p, v_h, (((1,), (0,)), ((), ())),
                             preferred_element_type=jnp.float32)   # (tq, hd)
        acc_sc[h] = alpha * acc_sc[h] + pv

    @pl.when(ki == nk - 1)
    def _finalize():
        parts = []
        for h in range(num_heads):
            inv_l = pl.reciprocal(l_sc[h][:, :1], approx=False)    # exact, tiny
            parts.append((acc_sc[h] * inv_l).astype(o_ref.dtype))
        o_ref[0] = jnp.concatenate(parts, axis=-1)                 # one (tq, H) store


# --------------------------------------------------------------------------- #
# wrapper
# --------------------------------------------------------------------------- #
def self_attention(x, wq, bq, wk, bk, wv, bv, *, num_heads,
                   q_tile=None, kv_tile=None, seq_tile=None,
                   compute_dtype=jnp.bfloat16):
    """x: (B, S, D_in); wq/wk/wv: (D_in, H); bq/bk/bv: (H,). Returns (B, S, H)."""
    B, S, D_in = x.shape
    H = wq.shape[1]
    assert H % num_heads == 0
    head_dim = H // num_heads
    scale = 1.0 / math.sqrt(head_dim)

    caps = _tpu_defaults()
    tq = q_tile or _pick_tile(S, caps["q_cap"])
    tk = kv_tile or _pick_tile(S, caps["kv_cap"])
    ts = seq_tile or _pick_tile(S, caps["q_cap"])
    assert S % tq == 0 and S % tk == 0 and S % ts == 0

    # Fused (D_in, 3H) projection weight; MXU inputs in bf16, bias stays f32.
    w_qkv = jnp.concatenate([wq, wk, wv], axis=1).astype(compute_dtype)
    b_qkv = jnp.concatenate([bq, bk, bv]).reshape(1, 3 * H).astype(jnp.float32)

    # ---- stage 1: fused QKV projection (x read from HBM once) ---------------
    try:
        q, k, v = _qkv_projection(x, w_qkv, b_qkv, H, scale, ts, compute_dtype,
                                  caps["vmem_limit"], True)
    except Exception:
        q, k, v = _qkv_projection(x, w_qkv, b_qkv, H, scale, ts, compute_dtype,
                                  caps["vmem_limit"], False)

    # ---- stage 2: flash attention over the projected Q/K/V ------------------
    kernel = functools.partial(_flash_attn_kernel,
                               num_heads=num_heads, head_dim=head_dim)
    grid = (B, S // tq, S // tk)          # kv reduction axis last / innermost

    q_spec = pl.BlockSpec((1, tq, H), lambda b, qi, ki: (b, qi, 0))
    kv_spec = pl.BlockSpec((1, tk, H), lambda b, qi, ki: (b, ki, 0))
    o_spec = pl.BlockSpec((1, tq, H), lambda b, qi, ki: (b, qi, 0))

    return pl.pallas_call(
        kernel,
        out_shape=jax.ShapeDtypeStruct((B, S, H), x.dtype),
        grid_spec=pltpu.PrefetchScalarGridSpec(
            num_scalar_prefetch=0,
            grid=grid,
            in_specs=[q_spec, kv_spec, kv_spec],
            out_specs=o_spec,
            scratch_shapes=[
                pltpu.VMEM((num_heads, tq, 128), jnp.float32),        # running max
                pltpu.VMEM((num_heads, tq, 128), jnp.float32),        # running sum
                pltpu.VMEM((num_heads, tq, head_dim), jnp.float32),   # out accumulator
            ]),
        compiler_params=pltpu.CompilerParams(
            dimension_semantics=("parallel", "parallel", "arbitrary"),
            vmem_limit_bytes=caps["vmem_limit"]),
    )(q, k, v)


# --------------------------------------------------------------------------- #
# reference + test
# --------------------------------------------------------------------------- #
def _reference(x, wq, bq, wk, bk, wv, bv, num_heads):
    B, S, D_in = x.shape
    H = wq.shape[1]
    hd = H // num_heads
    q = x @ wq + bq
    k = x @ wk + bk
    v = x @ wv + bv

    def split(t):
        return t.reshape(B, S, num_heads, hd).transpose(0, 2, 1, 3)

    qh, kh, vh = split(q), split(k), split(v)
    scores = jnp.einsum('bhqd,bhkd->bhqk', qh, kh) / math.sqrt(hd)
    probs = jax.nn.softmax(scores, axis=-1)
    ctx = jnp.einsum('bhqk,bhkd->bhqd', probs, vh)
    return ctx.transpose(0, 2, 1, 3).reshape(B, S, H)


if __name__ == "__main__":
    # small shapes consistent with the module:
    # batch=2, seq=8, input_size=16, hidden_size=32, num_heads=4
    B, S, D_in, H, NH = 2, 8, 16, 32, 4

    key = jax.random.PRNGKey(0)
    kx, kq, kk, kv_, kbq, kbk, kbv = jax.random.split(key, 7)

    x = jax.random.normal(kx, (B, S, D_in), dtype=jnp.float32)

    # PyTorch Linear weight is (out, in); generate (out, in) and transpose to
    # (in, out) for the kernel.
    wscale = 1.0 / math.sqrt(D_in)
    wq = jax.random.uniform(kq, (H, D_in), minval=-wscale, maxval=wscale).T
    wk = jax.random.uniform(kk, (H, D_in), minval=-wscale, maxval=wscale).T
    wv = jax.random.uniform(kv_, (H, D_in), minval=-wscale, maxval=wscale).T
    bq = jax.random.uniform(kbq, (H,), minval=-wscale, maxval=wscale)
    bk = jax.random.uniform(kbk, (H,), minval=-wscale, maxval=wscale)
    bv = jax.random.uniform(kbv, (H,), minval=-wscale, maxval=wscale)

    out = self_attention(x, wq, bq, wk, bk, wv, bv, num_heads=NH)
    out = jax.block_until_ready(out)

    ref = _reference(x, wq, bq, wk, bk, wv, bv, NH)
    assert out.shape == (B, S, H)
    # tolerance reflects the bf16 MXU/exp compute path (f32 accumulation).
    err = float(jnp.max(jnp.abs(out - ref)))
    assert jnp.allclose(out, ref, atol=2e-2, rtol=2e-2), \
        f"mismatch vs reference (max abs err {err})"

    print("KERNEL_OK")
</pallas_src>

<mosaic_0001>
module attributes {stable_mosaic.version = 11 : i64} {
  func.func @_qkv_proj_kernel(%arg0: i32, %arg1: i32, %arg2: memref<1x8x16xf32, #tpu.memory_space<vmem>>, %arg3: memref<16x96xbf16, #tpu.memory_space<vmem>>, %arg4: memref<1x96xf32, #tpu.memory_space<vmem>>, %arg5: memref<1x8x32xbf16, #tpu.memory_space<vmem>>, %arg6: memref<1x8x32xbf16, #tpu.memory_space<vmem>>, %arg7: memref<1x8x32xbf16, #tpu.memory_space<vmem>>) attributes {dimension_semantics = [#tpu.dimension_semantics<parallel>, #tpu.dimension_semantics<parallel>], iteration_bounds = array<i64: 2, 1>, scalar_prefetch = 0 : i64, scratch_operands = 0 : i64, tpu.core_type = #tpu.core_type<tc>, window_params = [{transform_indices = @transform_0, window_bounds = array<i64: 1, 8, 16>}, {pipeline_mode = #tpu.pipeline_mode<synchronous>, transform_indices = @transform_1, window_bounds = array<i64: 16, 96>}, {pipeline_mode = #tpu.pipeline_mode<synchronous>, transform_indices = @transform_2, window_bounds = array<i64: 1, 96>}, {transform_indices = @transform_3, window_bounds = array<i64: 1, 8, 32>}, {transform_indices = @transform_4, window_bounds = array<i64: 1, 8, 32>}, {transform_indices = @transform_5, window_bounds = array<i64: 1, 8, 32>}]} {
    %c0 = arith.constant 0 : index
    %c0_0 = arith.constant 0 : index
    %c0_1 = arith.constant 0 : index
    %0 = vector.load %arg2[%c0, %c0_0, %c0_1] : memref<1x8x16xf32, #tpu.memory_space<vmem>>, vector<1x8x16xf32>
    %1 = vector.shape_cast %0 : vector<1x8x16xf32> to vector<8x16xf32>
    %2 = arith.truncf %1 : vector<8x16xf32> to vector<8x16xbf16>
    %c0_2 = arith.constant 0 : index
    %c0_3 = arith.constant 0 : index
    %3 = vector.load %arg3[%c0_2, %c0_3] : memref<16x96xbf16, #tpu.memory_space<vmem>>, vector<16x96xbf16>
    %cst = arith.constant dense<0.000000e+00> : vector<8x96xf32>
    %4 = tpu.matmul %2, %3, %cst {dimension_numbers = #tpu.dot_dimension_numbers<[1], [0], [0], [1], [0, 0, 1, 1], [], []>} : vector<8x16xbf16>, vector<16x96xbf16>, vector<8x96xf32> -> vector<8x96xf32>
    %c0_4 = arith.constant 0 : index
    %c0_5 = arith.constant 0 : index
    %5 = vector.load %arg4[%c0_4, %c0_5] : memref<1x96xf32, #tpu.memory_space<vmem>>, vector<1x96xf32>
    %6 = vector.broadcast %5 : vector<1x96xf32> to vector<8x96xf32>
    %7 = arith.addf %4, %6 : vector<8x96xf32>
    %8 = vector.extract_strided_slice %7 {offsets = [0, 0], sizes = [8, 32], strides = [1, 1]} : vector<8x96xf32> to vector<8x32xf32>
    %cst_6 = arith.constant 0.353553385 : f32
    %9 = vector.broadcast %cst_6 : f32 to vector<8x32xf32>
    %10 = arith.mulf %8, %9 : vector<8x32xf32>
    %11 = arith.truncf %10 : vector<8x32xf32> to vector<8x32xbf16>
    %c0_7 = arith.constant 0 : index
    %c0_8 = arith.constant 0 : index
    %c0_9 = arith.constant 0 : index
    %12 = vector.load %arg5[%c0_7, %c0_8, %c0_9] : memref<1x8x32xbf16, #tpu.memory_space<vmem>>, vector<1x8x32xbf16>
    %13 = vector.shape_cast %12 : vector<1x8x32xbf16> to vector<8x32xbf16>
    %14 = vector.shape_cast %11 : vector<8x32xbf16> to vector<1x8x32xbf16>
    tpu.vector_store %arg5[%c0_7, %c0_8, %c0_9], %14 {strides = array<i32>} : memref<1x8x32xbf16, #tpu.memory_space<vmem>>, vector<1x8x32xbf16>,
    %15 = vector.extract_strided_slice %7 {offsets = [0, 32], sizes = [8, 32], strides = [1, 1]} : vector<8x96xf32> to vector<8x32xf32>
    %16 = arith.truncf %15 : vector<8x32xf32> to vector<8x32xbf16>
    %c0_10 = arith.constant 0 : index
    %c0_11 = arith.constant 0 : index
    %c0_12 = arith.constant 0 : index
    %17 = vector.load %arg6[%c0_10, %c0_11, %c0_12] : memref<1x8x32xbf16, #tpu.memory_space<vmem>>, vector<1x8x32xbf16>
    %18 = vector.shape_cast %17 : vector<1x8x32xbf16> to vector<8x32xbf16>
    %19 = vector.shape_cast %16 : vector<8x32xbf16> to vector<1x8x32xbf16>
    tpu.vector_store %arg6[%c0_10, %c0_11, %c0_12], %19 {strides = array<i32>} : memref<1x8x32xbf16, #tpu.memory_space<vmem>>, vector<1x8x32xbf16>,
    %20 = vector.extract_strided_slice %7 {offsets = [0, 64], sizes = [8, 32], strides = [1, 1]} : vector<8x96xf32> to vector<8x32xf32>
    %21 = arith.truncf %20 : vector<8x32xf32> to vector<8x32xbf16>
    %c0_13 = arith.constant 0 : index
    %c0_14 = arith.constant 0 : index
    %c0_15 = arith.constant 0 : index
    %22 = vector.load %arg7[%c0_13, %c0_14, %c0_15] : memref<1x8x32xbf16, #tpu.memory_space<vmem>>, vector<1x8x32xbf16>
    %23 = vector.shape_cast %22 : vector<1x8x32xbf16> to vector<8x32xbf16>
    %24 = vector.shape_cast %21 : vector<8x32xbf16> to vector<1x8x32xbf16>
    tpu.vector_store %arg7[%c0_13, %c0_14, %c0_15], %24 {strides = array<i32>} : memref<1x8x32xbf16, #tpu.memory_space<vmem>>, vector<1x8x32xbf16>,
    return
  }
  func.func @transform_0(%arg0: i32, %arg1: i32) -> (i32, i32, i32) {
    %c0_i32 = arith.constant 0 : i32
    %c0_i32_0 = arith.constant 0 : i32
    return %arg0, %arg1, %c0_i32 : i32, i32, i32
  }
  func.func @transform_1(%arg0: i32, %arg1: i32) -> (i32, i32) {
    %c0_i32 = arith.constant 0 : i32
    %c0_i32_0 = arith.constant 0 : i32
    %c0_i32_1 = arith.constant 0 : i32
    return %c0_i32, %c0_i32_0 : i32, i32
  }
  func.func @transform_2(%arg0: i32, %arg1: i32) -> (i32, i32) {
    %c0_i32 = arith.constant 0 : i32
    %c0_i32_0 = arith.constant 0 : i32
    %c0_i32_1 = arith.constant 0 : i32
    return %c0_i32, %c0_i32_0 : i32, i32
  }
  func.func @transform_3(%arg0: i32, %arg1: i32) -> (i32, i32, i32) {
    %c0_i32 = arith.constant 0 : i32
    %c0_i32_0 = arith.constant 0 : i32
    return %arg0, %arg1, %c0_i32 : i32, i32, i32
  }
  func.func @transform_4(%arg0: i32, %arg1: i32) -> (i32, i32, i32) {
    %c0_i32 = arith.constant 0 : i32
    %c0_i32_0 = arith.constant 0 : i32
    return %arg0, %arg1, %c0_i32 : i32, i32, i32
  }
  func.func @transform_5(%arg0: i32, %arg1: i32) -> (i32, i32, i32) {
    %c0_i32 = arith.constant 0 : i32
    %c0_i32_0 = arith.constant 0 : i32
    return %arg0, %arg1, %c0_i32 : i32, i32, i32
  }
}

module attributes {stable_mosaic.version = 11 : i64} {
  func.func @_qkv_proj_kernel(%arg0: i32, %arg1: i32, %arg2: memref<1x8x16xf32, #tpu.memory_space<vmem>>, %arg3: memref<16x96xbf16, #tpu.memory_space<vmem>>, %arg4: memref<1x96xf32, #tpu.memory_space<vmem>>, %arg5: memref<1x8x32xbf16, #tpu.memory_space<vmem>>, %arg6: memref<1x8x32xbf16, #tpu.memory_space<vmem>>, %arg7: memref<1x8x32xbf16, #tpu.memory_space<vmem>>) attributes {dimension_semantics = [#tpu.dimension_semantics<parallel>, #tpu.dimension_semantics<parallel>], iteration_bounds = array<i64: 2, 1>, scalar_prefetch = 0 : i64, scratch_operands = 0 : i64, tpu.core_type = #tpu.core_type<tc>, window_params = [{transform_indices = @transform_0, window_bounds = array<i64: 1, 8, 16>}, {pipeline_mode = #tpu.pipeline_mode<synchronous>, transform_indices = @transform_1, window_bounds = array<i64: 16, 96>}, {pipeline_mode = #tpu.pipeline_mode<synchronous>, transform_indices = @transform_2, window_bounds = array<i64: 1, 96>}, {transform_indices = @transform_3, window_bounds = array<i64: 1, 8, 32>}, {transform_indices = @transform_4, window_bounds = array<i64: 1, 8, 32>}, {transform_indices = @transform_5, window_bounds = array<i64: 1, 8, 32>}]} {
    %c0 = arith.constant 0 : index
    %c0_0 = arith.constant 0 : index
    %c0_1 = arith.constant 0 : index
    %0 = vector.load %arg2[%c0, %c0_0, %c0_1] : memref<1x8x16xf32, #tpu.memory_space<vmem>>, vector<1x8x16xf32>
    %1 = vector.shape_cast %0 : vector<1x8x16xf32> to vector<8x16xf32>
    %2 = arith.truncf %1 : vector<8x16xf32> to vector<8x16xbf16>
    %c0_2 = arith.constant 0 : index
    %c0_3 = arith.constant 0 : index
    %3 = vector.load %arg3[%c0_2, %c0_3] : memref<16x96xbf16, #tpu.memory_space<vmem>>, vector<16x96xbf16>
    %cst = arith.constant dense<0.000000e+00> : vector<8x96xf32>
    %4 = tpu.matmul %2, %3, %cst {dimension_numbers = #tpu.dot_dimension_numbers<[1], [0], [0], [1], [0, 0, 1, 1], [], []>} : vector<8x16xbf16>, vector<16x96xbf16>, vector<8x96xf32> -> vector<8x96xf32>
    %c0_4 = arith.constant 0 : index
    %c0_5 = arith.constant 0 : index
    %5 = vector.load %arg4[%c0_4, %c0_5] : memref<1x96xf32, #tpu.memory_space<vmem>>, vector<1x96xf32>
    %6 = vector.broadcast %5 : vector<1x96xf32> to vector<8x96xf32>
    %7 = arith.addf %4, %6 : vector<8x96xf32>
    %8 = vector.extract_strided_slice %7 {offsets = [0, 0], sizes = [8, 32], strides = [1, 1]} : vector<8x96xf32> to vector<8x32xf32>
    %cst_6 = arith.constant 0.353553385 : f32
    %9 = vector.broadcast %cst_6 : f32 to vector<8x32xf32>
    %10 = arith.mulf %8, %9 : vector<8x32xf32>
    %11 = arith.truncf %10 : vector<8x32xf32> to vector<8x32xbf16>
    %c0_7 = arith.constant 0 : index
    %c0_8 = arith.constant 0 : index
    %c0_9 = arith.constant 0 : index
    %12 = vector.load %arg5[%c0_7, %c0_8, %c0_9] : memref<1x8x32xbf16, #tpu.memory_space<vmem>>, vector<1x8x32xbf16>
    %13 = vector.shape_cast %12 : vector<1x8x32xbf16> to vector<8x32xbf16>
    %14 = vector.shape_cast %11 : vector<8x32xbf16> to vector<1x8x32xbf16>
    tpu.vector_store %arg5[%c0_7, %c0_8, %c0_9], %14 {strides = array<i32>} : memref<1x8x32xbf16, #tpu.memory_space<vmem>>, vector<1x8x32xbf16>,
    %15 = vector.extract_strided_slice %7 {offsets = [0, 32], sizes = [8, 32], strides = [1, 1]} : vector<8x96xf32> to vector<8x32xf32>
    %16 = arith.truncf %15 : vector<8x32xf32> to vector<8x32xbf16>
    %c0_10 = arith.constant 0 : index
    %c0_11 = arith.constant 0 : index
    %c0_12 = arith.constant 0 : index
    %17 = vector.load %arg6[%c0_10, %c0_11, %c0_12] : memref<1x8x32xbf16, #tpu.memory_space<vmem>>, vector<1x8x32xbf16>
    %18 = vector.shape_cast %17 : vector<1x8x32xbf16> to vector<8x32xbf16>
    %19 = vector.shape_cast %16 : vector<8x32xbf16> to vector<1x8x32xbf16>
    tpu.vector_store %arg6[%c0_10, %c0_11, %c0_12], %19 {strides = array<i32>} : memref<1x8x32xbf16, #tpu.memory_space<vmem>>, vector<1x8x32xbf16>,
    %20 = vector.extract_strided_slice %7 {offsets = [0, 64], sizes = [8, 32], strides = [1, 1]} : vector<8x96xf32> to vector<8x32xf32>
    %21 = arith.truncf %20 : vector<8x32xf32> to vector<8x32xbf16>
    %c0_13 = arith.constant 0 : index
    %c0_14 = arith.constant 0 : index
    %c0_15 = arith.constant 0 : index
    %22 = vector.load %arg7[%c0_13, %c0_14, %c0_15] : memref<1x8x32xbf16, #tpu.memory_space<vmem>>, vector<1x8x32xbf16>
    %23 = vector.shape_cast %22 : vector<1x8x32xbf16> to vector<8x32xbf16>
    %24 = vector.shape_cast %21 : vector<8x32xbf16> to vector<1x8x32xbf16>
    tpu.vector_store %arg7[%c0_13, %c0_14, %c0_15], %24 {strides = array<i32>} : memref<1x8x32xbf16, #tpu.memory_space<vmem>>, vector<1x8x32xbf16>,
    return
  }
  func.func @transform_0(%arg0: i32, %arg1: i32) -> (i32, i32, i32) {
    %c0_i32 = arith.constant 0 : i32
    %c0_i32_0 = arith.constant 0 : i32
    return %arg0, %arg1, %c0_i32 : i32, i32, i32
  }
  func.func @transform_1(%arg0: i32, %arg1: i32) -> (i32, i32) {
    %c0_i32 = arith.constant 0 : i32
    %c0_i32_0 = arith.constant 0 : i32
    %c0_i32_1 = arith.constant 0 : i32
    return %c0_i32, %c0_i32_0 : i32, i32
  }
  func.func @transform_2(%arg0: i32, %arg1: i32) -> (i32, i32) {
    %c0_i32 = arith.constant 0 : i32
    %c0_i32_0 = arith.constant 0 : i32
    %c0_i32_1 = arith.constant 0 : i32
    return %c0_i32, %c0_i32_0 : i32, i32
  }
  func.func @transform_3(%arg0: i32, %arg1: i32) -> (i32, i32, i32) {
    %c0_i32 = arith.constant 0 : i32
    %c0_i32_0 = arith.constant 0 : i32
    return %arg0, %arg1, %c0_i32 : i32, i32, i32
  }
  func.func @transform_4(%arg0: i32, %arg1: i32) -> (i32, i32, i32) {
    %c0_i32 = arith.constant 0 : i32
    %c0_i32_0 = arith.constant 0 : i32
    return %arg0, %arg1, %c0_i32 : i32, i32, i32
  }
  func.func @transform_5(%arg0: i32, %arg1: i32) -> (i32, i32, i32) {
    %c0_i32 = arith.constant 0 : i32
    %c0_i32_0 = arith.constant 0 : i32
    return %arg0, %arg1, %c0_i32 : i32, i32, i32
  }
}

</mosaic_0001>

<bundles_post_ra>
// kernel: tpu_custom_call.1
= control target key start
LH: loop header
LB: loop body
LE: loop exit
PB: predicated region body
PF: predicated region fallthrough
CT: control target
= control target key end

     0   :  { %11 = vsyncpa [#allocation3], 0  ;;  %s1248_s0 = inlined_call_operand.hbm [shape: f32[2,8,16], index: 0, kind: input, shape index: {}]   ;;  %s1249_s1 = inlined_call_operand.hbm [shape: bf16[16,96], index: 1, kind: input, shape index: {}]   ;;  %s1250_s2 = inlined_call_operand.vmem [shape: f32[1,96], index: 2, kind: input, shape index: {}]   ;;  %s1251_s3 = inlined_call_operand.hbm [shape: bf16[2,8,32], index: 3, kind: output, shape index: {0}]   ;;  %s1252_s4 = inlined_call_operand.hbm [shape: bf16[2,8,32], index: 4, kind: output, shape index: {1}]   ;;  %s1253_s5 = inlined_call_operand.hbm [shape: bf16[2,8,32], index: 5, kind: output, shape index: {2}]  }
   0x1   :  { %13 = vsyncpa [#allocation3 + $0x1], 0 }
   0x2   :  { %14 = vsyncpa [#allocation6], 0 }
   0x3   :  { %15 = vsyncpa [#allocation4], 0 }
   0x4   :  { %17 = vsyncpa [#allocation4 + $0x1], 0 }
   0x5   :  { %18 = vsyncpa [#allocation9], 0 }
   0x6   :  { %20 = vsyncpa [#allocation9 + $0x1], 0  ;;  %s949_s18 = smov 0   ;;  %s951_s19 = smov 0  }
   0x7   :  { %s953_s20 = smov 0   ;;  %s955_s21 = smov 0  }
   0x8   :  { %s957_s22 = smov 0   ;;  %s959_s23 = smov 0  }
   0x9 LB: > { %s980_s24 = sadd.s32 4294967295, %s906_s23   ;;  %s1257_s25 = sadd.s32 4294967294, %s906_s23   ;;  %s906_s23 = sphi %s959_s23, %s26_s23   ;;  %s902_s22 = sphi %s957_s22, %s1277_s22   ;;  %s898_s21 = sphi %s955_s21, %s1276_s21   ;;  %s894_s20 = sphi %s953_s20, %s1275_s20   ;;  %s890_s19 = sphi %s951_s19, %s1274_s19   ;;  %s886_s18 = sphi %s949_s18, %s1273_s18  }
   0xa   : > { %p60_p0 = scmp.ne.s32.totalorder %s890_s19, %s886_s18  ;;  %p1254_p1 = scmp.eq.s32.totalorder %s980_s24, 0 }
   0xb   : > { %p134_p3 = scmp.eq.s32.totalorder %s1257_s25, 1  ;;  %p580_p5 = scmp.ge.s32.totalorder %s906_s23, 1 }
   0xc   : > { %p991_p4 = por %p1254_p1, %p60_p0  ;;  %p197_p7 = scmp.lt.s32.totalorder %s906_s23, 3 }
   0xd   : > { %p996_p6 = por %p134_p3, %p60_p0  ;;  %s908_s29 = smov [#allocation5]  }
   0xe   : > { %s1258_s26 = scalar_select %p991_p4, 1, 0 }
   0xf   : > { %s1259_s27 = scalar_select %p996_p6, 1, 0 }
  0x10   : > { %p1001_p8 = pnand %p580_p5, %p197_p7  ;;  %s209_s30 = sshll.u32 %s908_s29, 4  ;;  %s210_s30 = int_to_ptr.vmem [resolvable:$true] %s209_s30 }
  0x11   : > { %s38_s7 = sadd.s32 1, %s902_s22  ;;  %s702_s10 = scalar_lea.hbm %s1249_s1, 128 }
  0x12   : > { %s1260_s28 = scalar_select %p1001_p8, 1, 0 }
  0x13   : > { %p624_p9 = pneg %p1001_p8  ;;  %p703_p12 = scmp.ne.s32.totalorder %s1249_s1, %s702_s10 }
  0x14   : > { %p709_p5 = scmp.lt.u32.totalorder %s702_s10, %s1249_s1 }
  0x15   : > { %p1010_p11 = pnand %p624_p9, %p1254_p1 }
  0x17   : > { %p704_p13 = pneg %p1010_p11 }
  0x19   : > { %p705_p0 = pnand %p704_p13, %p703_p12 }
  0x1b   : > { %p706_p3 = pneg %p705_p0 }
  0x1d   : > { %p711_p7 = pnand %p709_p5, %p706_p3 }
  0x1f   : > { %714 = shalt.err (!%p711_p7)
}
  0x20   : > { %s715_s15 = scalar_lea.vmem %s210_s30, 128  ;;  %p723_p2 = scmp.lt.s32.totalorder %s210_s30, %s210_s30 }
  0x21   : > { %p716_p9 = scmp.ne.s32.totalorder %s210_s30, %s715_s15  ;;  %p724_p6 = scmp.lt.s32.totalorder %s715_s15, %s715_s15 }
  0x23   : > { %p718_p10 = pnand %p716_p9, %p704_p13  ;;  %p725_p4 = por %p724_p6, %p723_p2 }
  0x25   : > { %p719_p1 = pneg %p718_p10 }
  0x27   : > { %p726_p8 = pnand %p725_p4, %p719_p1 }
  0x29   : > { %729 = shalt.err (!%p726_p8)
}
  0x2a   : > { %s909_s16 = smov 64   ;;  %s910_s17 = smov 4  }
  0x2b   : > { %627 = dma.hbm_to_vmem [thread:$0]  (!%p1010_p11), %s1249_s1, 128, %s210_s30, [#allocation6], %s909_s16, %s909_s16, %s910_s17  }
  0x2c   : > { %p40_p1 = scmp.ge.s32.totalorder %s38_s7, 2  ;;  %s47_s9 = sadd.s32 1, %s894_s20 }
  0x2d   : > { %p54_p2 = scmp.ne.s32.totalorder %s894_s20, %s890_s19  ;;  %p55_p4 = scmp.eq.s32.totalorder %s906_s23, 0 }
  0x2e   : > { %s1279_s7 = smov (%p40_p1, %s38_s7), 0  ;;  %p1263_p8 = scmp.eq.s32.totalorder %s980_s24, 1 }
  0x2f   : > { %p1037_p6 = por %p55_p4, %p54_p2  ;;  %s42_s6 = ssub.s32 %s902_s22, %s1279_s7 }
  0x30   : > { %p1043_p10 = por %p1263_p8, %p54_p2  ;;  %p643_p12 = scmp.lt.s32.totalorder %s906_s23, 2 }
  0x31   : > { %p45_p11 = scmp.eq.s32.totalorder %s42_s6, 0  ;;  %s226_s30 = sand.u32 1, %s894_s20  }
  0x32   : > { %s583_s12 = sshll.u32 %s226_s30, 3  ;;  %s584_s14 = sshll.u32 %s902_s22, 7 }
  0x33   : > { %s1052_s13 = scalar_select %p45_p11, %s894_s20, %s47_s9  }
  0x34   : > { %s1058_s17 = scalar_lea.hbm %s1248_s0, %s584_s14  ;;  %s230_s29 = scalar_lea.vmem [#allocation2], %s583_s12 }
  0x35   : > { %s238_s8 = sshll.u32 %s230_s29, 4  ;;  %p1064_p13 = pnand %p643_p12, %p1037_p6  ;;  %s1060_s8 = int_to_ptr.vmem [resolvable:$true] %s238_s8 }
  0x36   : > { %s227_s9 = scalar_lea.sflag [#allocation3], %s226_s30  ;;  %s730_s25 = scalar_lea.hbm %s1058_s17, 128 }
  0x37   : > { %p731_p0 = scmp.ne.s32.totalorder %s1058_s17, %s730_s25  ;;  %p732_p3 = pneg %p1064_p13 }
  0x38   : > { %s735_s15 = scalar_lea.hbm %s1248_s0, 256  ;;  %p736_p9 = scmp.lt.u32.totalorder %s1058_s17, %s1248_s0 }
  0x39   : > { %p733_p5 = pnand %p732_p3, %p731_p0  ;;  %p737_p1 = scmp.lt.u32.totalorder %s735_s15, %s730_s25 }
  0x3a   : > { %p739_p4 = scmp.lt.u32.totalorder %s730_s25, %s1058_s17 }
  0x3b   : > { %p734_p7 = pneg %p733_p5  ;;  %p738_p2 = por %p737_p1, %p736_p9 }
  0x3d   : > { %p740_p6 = por %p739_p4, %p738_p2 }
  0x3f   : > { %p741_p8 = pnand %p740_p6, %p734_p7 }
  0x41   : > { %744 = shalt.err (!%p741_p8)
}
  0x42   : > { %s745_s30 = scalar_lea.vmem %s1060_s8, 128  ;;  %s911_s29 = smov [#allocation2]  }
  0x43   : > { %p746_p12 = scmp.ne.s32.totalorder %s1060_s8, %s745_s30  ;;  %s750_s12 = sshll.u32 %s911_s29, 4  ;;  %s751_s12 = int_to_ptr.vmem [resolvable:$false] %s750_s12 }
  0x44   : > { %s752_s14 = scalar_lea.vmem %s751_s12, 256  ;;  %p753_p5 = scmp.lt.s32.totalorder %s1060_s8, %s751_s12 }
  0x45   : > { %p748_p11 = pnand %p746_p12, %p732_p3  ;;  %p754_p9 = scmp.lt.s32.totalorder %s752_s14, %s745_s30 }
  0x47   : > { %p749_p0 = pneg %p748_p11  ;;  %p755_p1 = por %p754_p9, %p753_p5 }
  0x49   : > { %p756_p2 = pnand %p755_p1, %p749_p0 }
  0x4b   : > { %759 = shalt.err (!%p756_p2)
}
  0x4c   : > { %631 = dma.hbm_to_vmem [thread:$0]  (!%p1064_p13), %s1058_s17, 128, %s1060_s8, %s227_s9  }
  0x4d   : > { %p1266_p7 = scmp.ne.s32.totalorder %s1260_s28, 0 }
  0x4e   : > { %s1096_s25 = sand.u32 (!%p1266_p7), 1, %s890_s19   ;;  %p1267_p3 = scmp.ne.s32.totalorder (!%p1266_p7), %s1258_s26, 0 }
  0x4f   : > { %247 = sbr.rel (%p1266_p7) target bundleno = 463 (0x1cf), region = 32  ;;  %s586_s15 = sshll.u32 (!%p1266_p7), %s1096_s25, 3 }
  0x50   : > { %s250_s10 = scalar_lea.sflag (!%p1266_p7), [#allocation3], %s1096_s25  ;;  %s253_s16 = scalar_lea.vmem (!%p1266_p7), [#allocation2], %s586_s15 }
  0x56   : > { %869 = dma.done.wait (%p1267_p3), %s250_s10, 128  }
  0x57   : > { %871 = vsyncadd (%p1267_p3), %s250_s10, 4294967168  ;;  %p1268_p4 = scmp.eq.s32.totalorder %s980_s24, 0 }
  0x59   : > { %873 = dma.done.wait (%p1268_p4), [#allocation6], 128   ;;  %p1269_p13 = pmov %p1268_p4 }
  0x5a   : > { %v912_v0 = vmov 0.0   ;;  %vm913_vm0 = vmmov 0   ;;  %v701_v1 = vld [vmem:[#allocation5] sm:$0xff]   ;;  %v295_v2 = vld [vmem:[%s253_s16] sm:$0xff]  ;;  %vm312_vm1 = vcmask 130048   ;;  %s1112_s17 = sshll.u32 %s1096_s25, 2 }
  0x5b   : > { %875 = vsyncadd (%p1269_p13), [#allocation6], 4294967168  ;;  %606 = vmatprep.subr.bf16.mxu0 %v912_v0  ;;  %608 = vmatprep.mubr.msk.bf16.mxu0 %vm913_vm0, %v912_v0  ;;  %v296_v3 = vpack.c.bf16 %v295_v2, %v295_v2  ;;  %v591_v4 = vld [vmem:[%s1250_s2] ss:$0 sm:$0xff]  ;;  %s1115_s8 = sshll.u32 %s898_s21, 6  ;;  %s279_s6 = scalar_lea.vmem [#allocation7], %s1112_s17 }
  0x5c   : > { %607 = vmatpush3.bf16.msra.mxu0 %v701_v1  ;;  %s397_s9 = sshll.u32 %s279_s6, 4  ;;  %vm358_vm2 = vcmask 257024   ;;  %s914_s30 = smov 96   ;;  %s1124_s9 = int_to_ptr.vmem [resolvable:$true] %s397_s9 }
  0x5d   : > { %s1122_s14 = scalar_lea.hbm %s1251_s3, %s1115_s8  ;;  %s373_s21 = scalar_lea.sflag [#allocation4], %s1096_s25 }
  0x5e   : > { %s760_s15 = scalar_lea.vmem %s1124_s9, 64  ;;  %s915_s10 = smov [#allocation7]  }
  0x5f   : > { %609 = vmatmul.mubr.msk.bf16.vlgmr.msra.gmra.mrb[0].mxu0 %vm312_vm1, %v296_v3  ;;  %p761_p6 = scmp.ne.s32.totalorder %s1124_s9, %s760_s15  ;;  %s764_s16 = sshll.u32 %s915_s10, 4  ;;  %s765_s16 = int_to_ptr.vmem [resolvable:$false] %s764_s16 }
  0x60   : > { %s766_s26 = scalar_lea.vmem %s765_s16, 128  ;;  %p767_p11 = scmp.lt.s32.totalorder %s1124_s9, %s765_s16 }
  0x61   : > { %p762_p8 = pnand %p761_p6, %p1043_p10  ;;  %p768_p0 = scmp.lt.s32.totalorder %s766_s26, %s760_s15 }
  0x63   : > { %p763_p12 = pneg %p762_p8  ;;  %p769_p5 = por %p768_p0, %p767_p11 }
  0x65   : > { %p770_p9 = pnand %p769_p5, %p763_p12 }
 0x132   : > { %v350_v5 = vpop.f32.mrb[0].mxu0 }
 0x133   : > { %v351_v6 = vadd.f32 %v591_v4, %v350_v5  ;;  %v610_v7 = vpop.f32.mrb[1].mxu0 }
 0x134   : > { %v353_v8 = vpop.f32.mrb[2].mxu0 }
 0x135   : > { %v356_v9 = vmul.f32 0.35355338, %v351_v6  ;;  %v611_v10 = vpop.f32.mrb[3].mxu0  ;;  %v603_v11 = vpack.c.bf16 %v351_v6, %v351_v6 }
 0x137   : > { %v357_v12 = vpack.c.bf16 %v356_v9, %v356_v9  ;;  %364 = vrot.lane.b32.xlu0 %v603_v11, %s914_s30 }
 0x139   : > { %359 = vst.msk [vmem:[%s279_s6] sm:$0xf] %vm358_vm2, %v357_v12 }
 0x13a   : > { %773 = shalt.err (!%p770_p9)
}
 0x13b   : > { %s774_s25 = scalar_lea.hbm %s1122_s14, 64  ;;  %s778_s30 = scalar_lea.hbm %s1251_s3, 128 }
 0x13c   : > { %p775_p1 = scmp.ne.s32.totalorder %s1122_s14, %s774_s25  ;;  %p779_p3 = scmp.lt.u32.totalorder %s1122_s14, %s1251_s3 }
 0x13d   : > { %p780_p4 = scmp.lt.u32.totalorder %s778_s30, %s774_s25  ;;  %p782_p6 = scmp.lt.u32.totalorder %s774_s25, %s1122_s14 }
 0x13e   : > { %p776_p2 = pnand %p775_p1, %p1043_p10 }
 0x13f   : > { %p781_p13 = por %p780_p4, %p779_p3 }
 0x140   : > { %p777_p7 = pneg %p776_p2 }
 0x141   : > { %p783_p8 = por %p782_p6, %p781_p13 }
 0x143   : > { %p784_p12 = pnand %p783_p8, %p777_p7 }
 0x145   : > { %787 = shalt.err (!%p784_p12)
}
 0x146   : > { %618 = dma.vmem_to_hbm [thread:$0]  (%p1043_p10), %s1124_s9, 64, %s1122_s14, %s373_s21  }
 0x147   : > { %s916_s15 = smov 64   ;;  %s377_s10 = sand.u32 1, %s980_s24  }
 0x148   : > { %368 = vrot.lane.b32.xlu0 %v603_v11, %s916_s15  ;;  %s286_s16 = scalar_lea.vmem [#allocation8], %s1112_s17  ;;  %s1155_s6 = scalar_lea.hbm %s1252_s4, %s1115_s8 }
 0x149   : > { %s411_s26 = sshll.u32 %s286_s16, 4  ;;  %s293_s30 = scalar_lea.vmem [#allocation10], %s1112_s17  ;;  %s1157_s26 = int_to_ptr.vmem [resolvable:$true] %s411_s26 }
 0x14a   : > { %s1162_s29 = sshll.u32 %s293_s30, 4  ;;  %s1165_s24 = scalar_lea.sflag [#allocation9], %s377_s10  ;;  %s1196_s29 = int_to_ptr.vmem [resolvable:$true] %s1162_s29 }
 0x14b   : > { %s788_s9 = scalar_lea.vmem %s1157_s26, 64  ;;  %s917_s14 = smov [#allocation8]  }
 0x14c   : > { %p789_p11 = scmp.ne.s32.totalorder %s1157_s26, %s788_s9  ;;  %s792_s21 = sshll.u32 %s917_s14, 4  ;;  %s793_s21 = int_to_ptr.vmem [resolvable:$false] %s792_s21 }
 0x14d   : > { %s794_s12 = scalar_lea.vmem %s793_s21, 128  ;;  %p795_p9 = scmp.lt.s32.totalorder %s1157_s26, %s793_s21 }
 0x14e   : > { %p790_p0 = pnand %p789_p11, %p1043_p10  ;;  %p796_p1 = scmp.lt.s32.totalorder %s794_s12, %s788_s9 }
 0x150   : > { %p791_p5 = pneg %p790_p0  ;;  %p797_p2 = por %p796_p1, %p795_p9 }
 0x152   : > { %p798_p7 = pnand %p797_p2, %p791_p5 }
 0x1a9   : > { %v365_v13 = vpop.permute.xlu0 %364 }
 0x1aa   : > { %367 = vst.msk [vmem:[%s286_s16] sm:$0xf] %vm358_vm2, %v365_v13 }
 0x1ab   : > { %801 = shalt.err (!%p798_p7)
}
 0x1ac   : > { %s802_s15 = scalar_lea.hbm %s1155_s6, 64  ;;  %s806_s25 = scalar_lea.hbm %s1252_s4, 128 }
 0x1ad   : > { %p803_p3 = scmp.ne.s32.totalorder %s1155_s6, %s802_s15  ;;  %p807_p6 = scmp.lt.u32.totalorder %s1155_s6, %s1252_s4 }
 0x1ae   : > { %p808_p8 = scmp.lt.u32.totalorder %s806_s25, %s802_s15  ;;  %p810_p11 = scmp.lt.u32.totalorder %s802_s15, %s1155_s6 }
 0x1af   : > { %p804_p4 = pnand %p803_p3, %p1043_p10 }
 0x1b0   : > { %p809_p12 = por %p808_p8, %p807_p6 }
 0x1b1   : > { %p805_p13 = pneg %p804_p4 }
 0x1b2   : > { %p811_p0 = por %p810_p11, %p809_p12 }
 0x1b4   : > { %p812_p5 = pnand %p811_p0, %p805_p13 }
 0x1b6   : > { %815 = shalt.err (!%p812_p5)
}
 0x1b7   : > { %619 = dma.vmem_to_hbm [thread:$0]  (%p1043_p10), %s1157_s26, 64, %s1155_s6, %s1165_s24  }
 0x1b8   : > { %s1193_s12 = scalar_lea.hbm %s1253_s5, %s1115_s8  ;;  %s816_s15 = scalar_lea.vmem %s1196_s29, 64 }
 0x1b9   : > { %p817_p9 = scmp.ne.s32.totalorder %s1196_s29, %s816_s15  ;;  %s918_s26 = smov [#allocation10]  }
 0x1ba   : > { %v369_v14 = vpop.permute.xlu0 %368  ;;  %s820_s6 = sshll.u32 %s918_s26, 4  ;;  %s821_s6 = int_to_ptr.vmem [resolvable:$false] %s820_s6 }
 0x1bb   : > { %371 = vst.msk [vmem:[%s293_s30] sm:$0xf] %vm358_vm2, %v369_v14  ;;  %p818_p1 = pnand %p817_p9, %p1043_p10  ;;  %s822_s10 = scalar_lea.vmem %s821_s6, 128 }
 0x1bc   : > { %p823_p7 = scmp.lt.s32.totalorder %s1196_s29, %s821_s6  ;;  %p824_p3 = scmp.lt.s32.totalorder %s822_s10, %s816_s15 }
 0x1bd   : > { %p819_p2 = pneg %p818_p1 }
 0x1be   : > { %p825_p4 = por %p824_p3, %p823_p7 }
 0x1c0   : > { %p826_p13 = pnand %p825_p4, %p819_p2 }
 0x1c2   : > { %829 = shalt.err (!%p826_p13)
}
 0x1c3   : > { %s830_s17 = scalar_lea.hbm %s1193_s12, 64  ;;  %s834_s16 = scalar_lea.hbm %s1253_s5, 128 }
 0x1c4   : > { %p831_p6 = scmp.ne.s32.totalorder %s1193_s12, %s830_s17  ;;  %p835_p11 = scmp.lt.u32.totalorder %s1193_s12, %s1253_s5 }
 0x1c5   : > { %p836_p0 = scmp.lt.u32.totalorder %s834_s16, %s830_s17  ;;  %p838_p9 = scmp.lt.u32.totalorder %s830_s17, %s1193_s12 }
 0x1c6   : > { %p832_p8 = pnand %p831_p6, %p1043_p10 }
 0x1c7   : > { %p837_p5 = por %p836_p0, %p835_p11 }
 0x1c8   : > { %p833_p12 = pneg %p832_p8 }
 0x1c9   : > { %p839_p1 = por %p838_p9, %p837_p5 }
 0x1cb   : > { %p840_p2 = pnand %p839_p1, %p833_p12 }
 0x1cd   : > { %843 = shalt.err (!%p840_p2)
}
 0x1ce   : > { %620 = dma.vmem_to_hbm [thread:$0]  (%p1043_p10), %s1196_s29, 64, %s1193_s12, %s1165_s24  }
 0x1cf PF: > { %s437_s14 = sand.u32 1, %s886_s18   ;;  %p1270_p7 = scmp.ne.s32.totalorder %s1259_s27, 0 }
 0x1d0   : > { %p1271_p3 = scmp.ge.s32.totalorder %s906_s23, 2  ;;  %s438_s9 = scalar_lea.sflag [#allocation4], %s437_s14 }
 0x1d2   : > { %p633_p4 = pnand %p1271_p3, %p1270_p7 }
 0x1d4   : > { %877 = dma.done.wait (!%p633_p4), %s438_s9, 64  }
 0x1d5   : > { %879 = vsyncadd (!%p633_p4), %s438_s9, 4294967232  ;;  %s1272_s21 = sadd.s32 4294967294, %s906_s23  }
 0x1d6   : > { %s446_s15 = sand.u32 1, %s1272_s21  }
 0x1d7   : > { %s447_s26 = scalar_lea.sflag [#allocation9], %s446_s15 }
 0x1d8   : > { %881 = dma.done.wait (!%p633_p4), %s447_s26, 128  }
 0x1d9   : > { %883 = vsyncadd (!%p633_p4), %s447_s26, 4294967168  ;;  %s26_s23 = sadd.s32 1, %s906_s23   ;;  %s1273_s18 = smov %s890_s19 }
 0x1da   : > { %p23_p10 = scmp.ge.s32.totalorder %s26_s23, 4   ;;  %s1274_s19 = smov %s894_s20 }
 0x1db   : > { %s1275_s20 = smov %s1052_s13  ;;  %s1276_s21 = smov %s902_s22 }
 0x1dc   : > { %s1277_s22 = smov %s1279_s7  ;;  %25 = sbr.rel (!%p23_p10) target bundleno = 9 (0x9), region = 113 }
 0x1e3   :  { %461 = vsyncpa [#allocation3], 1 }
 0x1e4   :  { %463 = vsyncpa [#allocation3 + $0x1], 1 }
 0x1e5   :  { %464 = vsyncpa [#allocation6], 1 }
 0x1e6   :  { %465 = vsyncpa [#allocation4], 1 }
 0x1e7   :  { %467 = vsyncpa [#allocation4 + $0x1], 1 }
 0x1e8   :  { %468 = vsyncpa [#allocation9], 1 }
 0x1e9   :  { %470 = vsyncpa [#allocation9 + $0x1], 1 }

// kernel: tpu_custom_call.1
= control target key start
LH: loop header
LB: loop body
LE: loop exit
PB: predicated region body
PF: predicated region fallthrough
CT: control target
= control target key end

     0   :  { %11 = vsyncpa [#allocation3], 0  ;;  %s1248_s0 = inlined_call_operand.hbm [shape: f32[2,8,16], index: 0, kind: input, shape index: {}]   ;;  %s1249_s1 = inlined_call_operand.hbm [shape: bf16[16,96], index: 1, kind: input, shape index: {}]   ;;  %s1250_s2 = inlined_call_operand.vmem [shape: f32[1,96], index: 2, kind: input, shape index: {}]   ;;  %s1251_s3 = inlined_call_operand.hbm [shape: bf16[2,8,32], index: 3, kind: output, shape index: {0}]   ;;  %s1252_s4 = inlined_call_operand.hbm [shape: bf16[2,8,32], index: 4, kind: output, shape index: {1}]   ;;  %s1253_s5 = inlined_call_operand.hbm [shape: bf16[2,8,32], index: 5, kind: output, shape index: {2}]  }
   0x1   :  { %13 = vsyncpa [#allocation3 + $0x1], 0 }
   0x2   :  { %14 = vsyncpa [#allocation6], 0 }
   0x3   :  { %15 = vsyncpa [#allocation4], 0 }
   0x4   :  { %17 = vsyncpa [#allocation4 + $0x1], 0 }
   0x5   :  { %18 = vsyncpa [#allocation9], 0 }
   0x6   :  { %20 = vsyncpa [#allocation9 + $0x1], 0  ;;  %s949_s18 = smov 0   ;;  %s951_s19 = smov 0  }
   0x7   :  { %s953_s20 = smov 0   ;;  %s955_s21 = smov 0  }
   0x8   :  { %s957_s22 = smov 0   ;;  %s959_s23 = smov 0  }
   0x9 LB: > { %s980_s24 = sadd.s32 4294967295, %s906_s23   ;;  %s1257_s25 = sadd.s32 4294967294, %s906_s23   ;;  %s906_s23 = sphi %s959_s23, %s26_s23   ;;  %s902_s22 = sphi %s957_s22, %s1277_s22   ;;  %s898_s21 = sphi %s955_s21, %s1276_s21   ;;  %s894_s20 = sphi %s953_s20, %s1275_s20   ;;  %s890_s19 = sphi %s951_s19, %s1274_s19   ;;  %s886_s18 = sphi %s949_s18, %s1273_s18  }
   0xa   : > { %p60_p0 = scmp.ne.s32.totalorder %s890_s19, %s886_s18  ;;  %p1254_p1 = scmp.eq.s32.totalorder %s980_s24, 0 }
   0xb   : > { %p134_p3 = scmp.eq.s32.totalorder %s1257_s25, 1  ;;  %p580_p5 = scmp.ge.s32.totalorder %s906_s23, 1 }
   0xc   : > { %p991_p4 = por %p1254_p1, %p60_p0  ;;  %p197_p7 = scmp.lt.s32.totalorder %s906_s23, 3 }
   0xd   : > { %p996_p6 = por %p134_p3, %p60_p0  ;;  %s908_s29 = smov [#allocation5]  }
   0xe   : > { %s1258_s26 = scalar_select %p991_p4, 1, 0 }
   0xf   : > { %s1259_s27 = scalar_select %p996_p6, 1, 0 }
  0x10   : > { %p1001_p8 = pnand %p580_p5, %p197_p7  ;;  %s209_s30 = sshll.u32 %s908_s29, 4  ;;  %s210_s30 = int_to_ptr.vmem [resolvable:$true] %s209_s30 }
  0x11   : > { %s38_s7 = sadd.s32 1, %s902_s22  ;;  %s702_s10 = scalar_lea.hbm %s1249_s1, 128 }
  0x12   : > { %s1260_s28 = scalar_select %p1001_p8, 1, 0 }
  0x13   : > { %p624_p9 = pneg %p1001_p8  ;;  %p703_p12 = scmp.ne.s32.totalorder %s1249_s1, %s702_s10 }
  0x14   : > { %p709_p5 = scmp.lt.u32.totalorder %s702_s10, %s1249_s1 }
  0x15   : > { %p1010_p11 = pnand %p624_p9, %p1254_p1 }
  0x17   : > { %p704_p13 = pneg %p1010_p11 }
  0x19   : > { %p705_p0 = pnand %p704_p13, %p703_p12 }
  0x1b   : > { %p706_p3 = pneg %p705_p0 }
  0x1d   : > { %p711_p7 = pnand %p709_p5, %p706_p3 }
  0x1f   : > { %714 = shalt.err (!%p711_p7)
}
  0x20   : > { %s715_s15 = scalar_lea.vmem %s210_s30, 128  ;;  %p723_p2 = scmp.lt.s32.totalorder %s210_s30, %s210_s30 }
  0x21   : > { %p716_p9 = scmp.ne.s32.totalorder %s210_s30, %s715_s15  ;;  %p724_p6 = scmp.lt.s32.totalorder %s715_s15, %s715_s15 }
  0x23   : > { %p718_p10 = pnand %p716_p9, %p704_p13  ;;  %p725_p4 = por %p724_p6, %p723_p2 }
  0x25   : > { %p719_p1 = pneg %p718_p10 }
  0x27   : > { %p726_p8 = pnand %p725_p4, %p719_p1 }
  0x29   : > { %729 = shalt.err (!%p726_p8)
}
  0x2a   : > { %s909_s16 = smov 64   ;;  %s910_s17 = smov 4  }
  0x2b   : > { %627 = dma.hbm_to_vmem [thread:$0]  (!%p1010_p11), %s1249_s1, 128, %s210_s30, [#allocation6], %s909_s16, %s909_s16, %s910_s17  }
  0x2c   : > { %p40_p1 = scmp.ge.s32.totalorder %s38_s7, 2  ;;  %s47_s9 = sadd.s32 1, %s894_s20 }
  0x2d   : > { %p54_p2 = scmp.ne.s32.totalorder %s894_s20, %s890_s19  ;;  %p55_p4 = scmp.eq.s32.totalorder %s906_s23, 0 }
  0x2e   : > { %s1279_s7 = smov (%p40_p1, %s38_s7), 0  ;;  %p1263_p8 = scmp.eq.s32.totalorder %s980_s24, 1 }
  0x2f   : > { %p1037_p6 = por %p55_p4, %p54_p2  ;;  %s42_s6 = ssub.s32 %s902_s22, %s1279_s7 }
  0x30   : > { %p1043_p10 = por %p1263_p8, %p54_p2  ;;  %p643_p12 = scmp.lt.s32.totalorder %s906_s23, 2 }
  0x31   : > { %p45_p11 = scmp.eq.s32.totalorder %s42_s6, 0  ;;  %s226_s30 = sand.u32 1, %s894_s20  }
  0x32   : > { %s583_s12 = sshll.u32 %s226_s30, 3  ;;  %s584_s14 = sshll.u32 %s902_s22, 7 }
  0x33   : > { %s1052_s13 = scalar_select %p45_p11, %s894_s20, %s47_s9  }
  0x34   : > { %s1058_s17 = scalar_lea.hbm %s1248_s0, %s584_s14  ;;  %s230_s29 = scalar_lea.vmem [#allocation2], %s583_s12 }
  0x35   : > { %s238_s8 = sshll.u32 %s230_s29, 4  ;;  %p1064_p13 = pnand %p643_p12, %p1037_p6  ;;  %s1060_s8 = int_to_ptr.vmem [resolvable:$true] %s238_s8 }
  0x36   : > { %s227_s9 = scalar_lea.sflag [#allocation3], %s226_s30  ;;  %s730_s25 = scalar_lea.hbm %s1058_s17, 128 }
  0x37   : > { %p731_p0 = scmp.ne.s32.totalorder %s1058_s17, %s730_s25  ;;  %p732_p3 = pneg %p1064_p13 }
  0x38   : > { %s735_s15 = scalar_lea.hbm %s1248_s0, 256  ;;  %p736_p9 = scmp.lt.u32.totalorder %s1058_s17, %s1248_s0 }
  0x39   : > { %p733_p5 = pnand %p732_p3, %p731_p0  ;;  %p737_p1 = scmp.lt.u32.totalorder %s735_s15, %s730_s25 }
  0x3a   : > { %p739_p4 = scmp.lt.u32.totalorder %s730_s25, %s1058_s17 }
  0x3b   : > { %p734_p7 = pneg %p733_p5  ;;  %p738_p2 = por %p737_p1, %p736_p9 }
  0x3d   : > { %p740_p6 = por %p739_p4, %p738_p2 }
  0x3f   : > { %p741_p8 = pnand %p740_p6, %p734_p7 }
  0x41   : > { %744 = shalt.err (!%p741_p8)
}
  0x42   : > { %s745_s30 = scalar_lea.vmem %s1060_s8, 128  ;;  %s911_s29 = smov [#allocation2]  }
  0x43   : > { %p746_p12 = scmp.ne.s32.totalorder %s1060_s8, %s745_s30  ;;  %s750_s12 = sshll.u32 %s911_s29, 4  ;;  %s751_s12 = int_to_ptr.vmem [resolvable:$false] %s750_s12 }
  0x44   : > { %s752_s14 = scalar_lea.vmem %s751_s12, 256  ;;  %p753_p5 = scmp.lt.s32.totalorder %s1060_s8, %s751_s12 }
  0x45   : > { %p748_p11 = pnand %p746_p12, %p732_p3  ;;  %p754_p9 = scmp.lt.s32.totalorder %s752_s14, %s745_s30 }
  0x47   : > { %p749_p0 = pneg %p748_p11  ;;  %p755_p1 = por %p754_p9, %p753_p5 }
  0x49   : > { %p756_p2 = pnand %p755_p1, %p749_p0 }
  0x4b   : > { %759 = shalt.err (!%p756_p2)
}
  0x4c   : > { %631 = dma.hbm_to_vmem [thread:$0]  (!%p1064_p13), %s1058_s17, 128, %s1060_s8, %s227_s9  }
  0x4d   : > { %p1266_p7 = scmp.ne.s32.totalorder %s1260_s28, 0 }
  0x4e   : > { %s1096_s25 = sand.u32 (!%p1266_p7), 1, %s890_s19   ;;  %p1267_p3 = scmp.ne.s32.totalorder (!%p1266_p7), %s1258_s26, 0 }
  0x4f   : > { %247 = sbr.rel (%p1266_p7) target bundleno = 463 (0x1cf), region = 32  ;;  %s586_s15 = sshll.u32 (!%p1266_p7), %s1096_s25, 3 }
  0x50   : > { %s250_s10 = scalar_lea.sflag (!%p1266_p7), [#allocation3], %s1096_s25  ;;  %s253_s16 = scalar_lea.vmem (!%p1266_p7), [#allocation2], %s586_s15 }
  0x56   : > { %869 = dma.done.wait (%p1267_p3), %s250_s10, 128  }
  0x57   : > { %871 = vsyncadd (%p1267_p3), %s250_s10, 4294967168  ;;  %p1268_p4 = scmp.eq.s32.totalorder %s980_s24, 0 }
  0x59   : > { %873 = dma.done.wait (%p1268_p4), [#allocation6], 128   ;;  %p1269_p13 = pmov %p1268_p4 }
  0x5a   : > { %v912_v0 = vmov 0.0   ;;  %vm913_vm0 = vmmov 0   ;;  %v701_v1 = vld [vmem:[#allocation5] sm:$0xff]   ;;  %v295_v2 = vld [vmem:[%s253_s16] sm:$0xff]  ;;  %vm312_vm1 = vcmask 130048   ;;  %s1112_s17 = sshll.u32 %s1096_s25, 2 }
  0x5b   : > { %875 = vsyncadd (%p1269_p13), [#allocation6], 4294967168  ;;  %606 = vmatprep.subr.bf16.mxu0 %v912_v0  ;;  %608 = vmatprep.mubr.msk.bf16.mxu0 %vm913_vm0, %v912_v0  ;;  %v296_v3 = vpack.c.bf16 %v295_v2, %v295_v2  ;;  %v591_v4 = vld [vmem:[%s1250_s2] ss:$0 sm:$0xff]  ;;  %s1115_s8 = sshll.u32 %s898_s21, 6  ;;  %s279_s6 = scalar_lea.vmem [#allocation7], %s1112_s17 }
  0x5c   : > { %607 = vmatpush3.bf16.msra.mxu0 %v701_v1  ;;  %s397_s9 = sshll.u32 %s279_s6, 4  ;;  %vm358_vm2 = vcmask 257024   ;;  %s914_s30 = smov 96   ;;  %s1124_s9 = int_to_ptr.vmem [resolvable:$true] %s397_s9 }
  0x5d   : > { %s1122_s14 = scalar_lea.hbm %s1251_s3, %s1115_s8  ;;  %s373_s21 = scalar_lea.sflag [#allocation4], %s1096_s25 }
  0x5e   : > { %s760_s15 = scalar_lea.vmem %s1124_s9, 64  ;;  %s915_s10 = smov [#allocation7]  }
  0x5f   : > { %609 = vmatmul.mubr.msk.bf16.vlgmr.msra.gmra.mrb[0].mxu0 %vm312_vm1, %v296_v3  ;;  %p761_p6 = scmp.ne.s32.totalorder %s1124_s9, %s760_s15  ;;  %s764_s16 = sshll.u32 %s915_s10, 4  ;;  %s765_s16 = int_to_ptr.vmem [resolvable:$false] %s764_s16 }
  0x60   : > { %s766_s26 = scalar_lea.vmem %s765_s16, 128  ;;  %p767_p11 = scmp.lt.s32.totalorder %s1124_s9, %s765_s16 }
  0x61   : > { %p762_p8 = pnand %p761_p6, %p1043_p10  ;;  %p768_p0 = scmp.lt.s32.totalorder %s766_s26, %s760_s15 }
  0x63   : > { %p763_p12 = pneg %p762_p8  ;;  %p769_p5 = por %p768_p0, %p767_p11 }
  0x65   : > { %p770_p9 = pnand %p769_p5, %p763_p12 }
 0x132   : > { %v350_v5 = vpop.f32.mrb[0].mxu0 }
 0x133   : > { %v351_v6 = vadd.f32 %v591_v4, %v350_v5  ;;  %v610_v7 = vpop.f32.mrb[1].mxu0 }
 0x134   : > { %v353_v8 = vpop.f32.mrb[2].mxu0 }
 0x135   : > { %v356_v9 = vmul.f32 0.35355338, %v351_v6  ;;  %v611_v10 = vpop.f32.mrb[3].mxu0  ;;  %v603_v11 = vpack.c.bf16 %v351_v6, %v351_v6 }
 0x137   : > { %v357_v12 = vpack.c.bf16 %v356_v9, %v356_v9  ;;  %364 = vrot.lane.b32.xlu0 %v603_v11, %s914_s30 }
 0x139   : > { %359 = vst.msk [vmem:[%s279_s6] sm:$0xf] %vm358_vm2, %v357_v12 }
 0x13a   : > { %773 = shalt.err (!%p770_p9)
}
 0x13b   : > { %s774_s25 = scalar_lea.hbm %s1122_s14, 64  ;;  %s778_s30 = scalar_lea.hbm %s1251_s3, 128 }
 0x13c   : > { %p775_p1 = scmp.ne.s32.totalorder %s1122_s14, %s774_s25  ;;  %p779_p3 = scmp.lt.u32.totalorder %s1122_s14, %s1251_s3 }
 0x13d   : > { %p780_p4 = scmp.lt.u32.totalorder %s778_s30, %s774_s25  ;;  %p782_p6 = scmp.lt.u32.totalorder %s774_s25, %s1122_s14 }
 0x13e   : > { %p776_p2 = pnand %p775_p1, %p1043_p10 }
 0x13f   : > { %p781_p13 = por %p780_p4, %p779_p3 }
 0x140   : > { %p777_p7 = pneg %p776_p2 }
 0x141   : > { %p783_p8 = por %p782_p6, %p781_p13 }
 0x143   : > { %p784_p12 = pnand %p783_p8, %p777_p7 }
 0x145   : > { %787 = shalt.err (!%p784_p12)
}
 0x146   : > { %618 = dma.vmem_to_hbm [thread:$0]  (%p1043_p10), %s1124_s9, 64, %s1122_s14, %s373_s21  }
 0x147   : > { %s916_s15 = smov 64   ;;  %s377_s10 = sand.u32 1, %s980_s24  }
 0x148   : > { %368 = vrot.lane.b32.xlu0 %v603_v11, %s916_s15  ;;  %s286_s16 = scalar_lea.vmem [#allocation8], %s1112_s17  ;;  %s1155_s6 = scalar_lea.hbm %s1252_s4, %s1115_s8 }
 0x149   : > { %s411_s26 = sshll.u32 %s286_s16, 4  ;;  %s293_s30 = scalar_lea.vmem [#allocation10], %s1112_s17  ;;  %s1157_s26 = int_to_ptr.vmem [resolvable:$true] %s411_s26 }
 0x14a   : > { %s1162_s29 = sshll.u32 %s293_s30, 4  ;;  %s1165_s24 = scalar_lea.sflag [#allocation9], %s377_s10  ;;  %s1196_s29 = int_to_ptr.vmem [resolvable:$true] %s1162_s29 }
 0x14b   : > { %s788_s9 = scalar_lea.vmem %s1157_s26, 64  ;;  %s917_s14 = smov [#allocation8]  }
 0x14c   : > { %p789_p11 = scmp.ne.s32.totalorder %s1157_s26, %s788_s9  ;;  %s792_s21 = sshll.u32 %s917_s14, 4  ;;  %s793_s21 = int_to_ptr.vmem [resolvable:$false] %s792_s21 }
 0x14d   : > { %s794_s12 = scalar_lea.vmem %s793_s21, 128  ;;  %p795_p9 = scmp.lt.s32.totalorder %s1157_s26, %s793_s21 }
 0x14e   : > { %p790_p0 = pnand %p789_p11, %p1043_p10  ;;  %p796_p1 = scmp.lt.s32.totalorder %s794_s12, %s788_s9 }
 0x150   : > { %p791_p5 = pneg %p790_p0  ;;  %p797_p2 = por %p796_p1, %p795_p9 }
 0x152   : > { %p798_p7 = pnand %p797_p2, %p791_p5 }
 0x1a9   : > { %v365_v13 = vpop.permute.xlu0 %364 }
 0x1aa   : > { %367 = vst.msk [vmem:[%s286_s16] sm:$0xf] %vm358_vm2, %v365_v13 }
 0x1ab   : > { %801 = shalt.err (!%p798_p7)
}
 0x1ac   : > { %s802_s15 = scalar_lea.hbm %s1155_s6, 64  ;;  %s806_s25 = scalar_lea.hbm %s1252_s4, 128 }
 0x1ad   : > { %p803_p3 = scmp.ne.s32.totalorder %s1155_s6, %s802_s15  ;;  %p807_p6 = scmp.lt.u32.totalorder %s1155_s6, %s1252_s4 }
 0x1ae   : > { %p808_p8 = scmp.lt.u32.totalorder %s806_s25, %s802_s15  ;;  %p810_p11 = scmp.lt.u32.totalorder %s802_s15, %s1155_s6 }
 0x1af   : > { %p804_p4 = pnand %p803_p3, %p1043_p10 }
 0x1b0   : > { %p809_p12 = por %p808_p8, %p807_p6 }
 0x1b1   : > { %p805_p13 = pneg %p804_p4 }
 0x1b2   : > { %p811_p0 = por %p810_p11, %p809_p12 }
 0x1b4   : > { %p812_p5 = pnand %p811_p0, %p805_p13 }
 0x1b6   : > { %815 = shalt.err (!%p812_p5)
}
 0x1b7   : > { %619 = dma.vmem_to_hbm [thread:$0]  (%p1043_p10), %s1157_s26, 64, %s1155_s6, %s1165_s24  }
 0x1b8   : > { %s1193_s12 = scalar_lea.hbm %s1253_s5, %s1115_s8  ;;  %s816_s15 = scalar_lea.vmem %s1196_s29, 64 }
 0x1b9   : > { %p817_p9 = scmp.ne.s32.totalorder %s1196_s29, %s816_s15  ;;  %s918_s26 = smov [#allocation10]  }
 0x1ba   : > { %v369_v14 = vpop.permute.xlu0 %368  ;;  %s820_s6 = sshll.u32 %s918_s26, 4  ;;  %s821_s6 = int_to_ptr.vmem [resolvable:$false] %s820_s6 }
 0x1bb   : > { %371 = vst.msk [vmem:[%s293_s30] sm:$0xf] %vm358_vm2, %v369_v14  ;;  %p818_p1 = pnand %p817_p9, %p1043_p10  ;;  %s822_s10 = scalar_lea.vmem %s821_s6, 128 }
 0x1bc   : > { %p823_p7 = scmp.lt.s32.totalorder %s1196_s29, %s821_s6  ;;  %p824_p3 = scmp.lt.s32.totalorder %s822_s10, %s816_s15 }
 0x1bd   : > { %p819_p2 = pneg %p818_p1 }
 0x1be   : > { %p825_p4 = por %p824_p3, %p823_p7 }
 0x1c0   : > { %p826_p13 = pnand %p825_p4, %p819_p2 }
 0x1c2   : > { %829 = shalt.err (!%p826_p13)
}
 0x1c3   : > { %s830_s17 = scalar_lea.hbm %s1193_s12, 64  ;;  %s834_s16 = scalar_lea.hbm %s1253_s5, 128 }
 0x1c4   : > { %p831_p6 = scmp.ne.s32.totalorder %s1193_s12, %s830_s17  ;;  %p835_p11 = scmp.lt.u32.totalorder %s1193_s12, %s1253_s5 }
 0x1c5   : > { %p836_p0 = scmp.lt.u32.totalorder %s834_s16, %s830_s17  ;;  %p838_p9 = scmp.lt.u32.totalorder %s830_s17, %s1193_s12 }
 0x1c6   : > { %p832_p8 = pnand %p831_p6, %p1043_p10 }
 0x1c7   : > { %p837_p5 = por %p836_p0, %p835_p11 }
 0x1c8   : > { %p833_p12 = pneg %p832_p8 }
 0x1c9   : > { %p839_p1 = por %p838_p9, %p837_p5 }
 0x1cb   : > { %p840_p2 = pnand %p839_p1, %p833_p12 }
 0x1cd   : > { %843 = shalt.err (!%p840_p2)
}
 0x1ce   : > { %620 = dma.vmem_to_hbm [thread:$0]  (%p1043_p10), %s1196_s29, 64, %s1193_s12, %s1165_s24  }
 0x1cf PF: > { %s437_s14 = sand.u32 1, %s886_s18   ;;  %p1270_p7 = scmp.ne.s32.totalorder %s1259_s27, 0 }
 0x1d0   : > { %p1271_p3 = scmp.ge.s32.totalorder %s906_s23, 2  ;;  %s438_s9 = scalar_lea.sflag [#allocation4], %s437_s14 }
 0x1d2   : > { %p633_p4 = pnand %p1271_p3, %p1270_p7 }
 0x1d4   : > { %877 = dma.done.wait (!%p633_p4), %s438_s9, 64  }
 0x1d5   : > { %879 = vsyncadd (!%p633_p4), %s438_s9, 4294967232  ;;  %s1272_s21 = sadd.s32 4294967294, %s906_s23  }
 0x1d6   : > { %s446_s15 = sand.u32 1, %s1272_s21  }
 0x1d7   : > { %s447_s26 = scalar_lea.sflag [#allocation9], %s446_s15 }
 0x1d8   : > { %881 = dma.done.wait (!%p633_p4), %s447_s26, 128  }
 0x1d9   : > { %883 = vsyncadd (!%p633_p4), %s447_s26, 4294967168  ;;  %s26_s23 = sadd.s32 1, %s906_s23   ;;  %s1273_s18 = smov %s890_s19 }
 0x1da   : > { %p23_p10 = scmp.ge.s32.totalorder %s26_s23, 4   ;;  %s1274_s19 = smov %s894_s20 }
 0x1db   : > { %s1275_s20 = smov %s1052_s13  ;;  %s1276_s21 = smov %s902_s22 }
 0x1dc   : > { %s1277_s22 = smov %s1279_s7  ;;  %25 = sbr.rel (!%p23_p10) target bundleno = 9 (0x9), region = 113 }
 0x1e3   :  { %461 = vsyncpa [#allocation3], 1 }
 0x1e4   :  { %463 = vsyncpa [#allocation3 + $0x1], 1 }
 0x1e5   :  { %464 = vsyncpa [#allocation6], 1 }
 0x1e6   :  { %465 = vsyncpa [#allocation4], 1 }
 0x1e7   :  { %467 = vsyncpa [#allocation4 + $0x1], 1 }
 0x1e8   :  { %468 = vsyncpa [#allocation9], 1 }
 0x1e9   :  { %470 = vsyncpa [#allocation9 + $0x1], 1 }

</bundles_post_ra>
